<compile_context>
chip_gen: v7x
topology: tpu7x:2x2x1
jax: 0.10.0
libtpu: 0.0.40
codegen_flags: <defaults>
</compile_context>

<pallas_src>
import jax
import jax.numpy as jnp
from jax.experimental import pallas as pl
from jax.experimental.pallas import tpu as pltpu


def _psp_warp_kernel(m_ref, xy_ref, out_ref):
    """m_ref: (B*8,) f32 SMEM; xy_ref/out_ref: (TR, C) lane-interleaved x,y / u,v."""
    b = pl.program_id(0)
    base = b * 8
    m0 = m_ref[base + 0]
    m1 = m_ref[base + 1]
    m2 = m_ref[base + 2]
    m3 = m_ref[base + 3]
    m4 = m_ref[base + 4]
    m5 = m_ref[base + 5]
    m6 = m_ref[base + 6]
    m7 = m_ref[base + 7]

    z = xy_ref[...].astype(jnp.float32)                    # (TR, C)
    C = z.shape[-1]

    # Parity mask computed once per step at (1, C); broadcast along sublanes.
    lane = jax.lax.broadcasted_iota(jnp.int32, (1, C), 1)
    is_x = (lane & 1) == 0                                  # even lanes hold x_i

    # Pair-partner values via +/-1 lane rotations (XLU slot, off the VPU path).
    # C is even, so the wrap-around lanes are never selected.
    z_next = pltpu.roll(z, shift=C - 1, axis=1)             # z_next[c] = z[c+1]
    z_prev = pltpu.roll(z, shift=1, axis=1)                 # z_prev[c] = z[c-1]
    xb = jnp.where(is_x, z, z_prev)                         # x_i at both lanes of pair i
    yb = jnp.where(is_x, z_next, z)                         # y_i at both lanes of pair i

    # Fused numerator: per-lane coefficient rows at (1, C) select between the
    # u-coefficients (even lanes) and v-coefficients (odd lanes) once, instead
    # of computing num_u and num_v on the full tile and selecting at the end.
    a = jnp.where(is_x, m0, m3)                              # (1, C)
    bcf = jnp.where(is_x, m1, m4)                            # (1, C)
    ccf = jnp.where(is_x, m2, m5)                            # (1, C)

    t = m6 * xb + m7 * yb + 1.0
    num = a * xb + bcf * yb + ccf
    # Exact division to match torch semantics (EUP approx reciprocal changes
    # numerics at ~1e-6; only worth it if VALU-bound on v7x).
    out_ref[...] = (num / t).astype(out_ref.dtype)


def _choose_tile_rows(R, C, B, bytes_budget=2 << 20):
    """Row-tile size: ~2 MiB tiles, multiple of 8 (or == R), prefers dividing R,
    and capped so the grid keeps enough steps for megacore / pipelining."""
    budget = max(8, bytes_budget // (4 * C))
    min_steps = max(1, -(-8 // max(B, 1)))      # aim for >= ~8 total grid steps
    cap = max(8, -(-R // min_steps))
    tr = min(R, budget, cap)
    if tr >= R:
        return R
    t = (tr // 8) * 8
    while t >= 8:                                # largest multiple of 8 dividing R
        if R % t == 0:
            return t
        t -= 8
    return max(8, (tr // 8) * 8)                 # non-dividing: partial last block


def psp_warp(xy, M):
    """xy: (B, N, 2), M: (B, 8, 1) -> (B, N, 2).  Matches PspWarp.forward."""
    B, N, two = xy.shape
    assert two == 2
    dtype = xy.dtype
    m_flat = M.astype(jnp.float32).reshape(B * 8)            # free reshape -> SMEM

    total = 2 * N
    C = 128
    pad = (-total) % C
    flat = xy.reshape(B, total)                              # free reshape
    if pad:
        # TODO(synk): mask the ragged tail in-kernel instead of padding (extra
        # HBM pass).  Pad is even, so x/y lane parity is preserved; padded
        # lanes give t = 1 (no NaNs) and are sliced off afterwards.
        flat = jnp.pad(flat, ((0, 0), (0, pad)))
    total_p = total + pad
    R = total_p // C
    xy3 = flat.reshape(B, R, C)                              # free reshape

    TR = _choose_tile_rows(R, C, B)
    nR = -(-R // TR)

    out3 = pl.pallas_call(
        _psp_warp_kernel,
        grid=(B, nR),
        in_specs=[
            pl.BlockSpec(memory_space=pltpu.MemorySpace.SMEM),   # coeffs in SMEM
            pl.BlockSpec((None, TR, C), lambda b, r: (b, r, 0)),
        ],
        out_specs=pl.BlockSpec((None, TR, C), lambda b, r: (b, r, 0)),
        out_shape=jax.ShapeDtypeStruct((B, R, C), dtype),
        compiler_params=pltpu.CompilerParams(
            dimension_semantics=("parallel", "parallel")),
    )(m_flat, xy3)

    if pad:
        out = out3.reshape(B, total_p)[:, :total]
        return out.reshape(B, N, 2)
    return out3.reshape(B, N, 2)                             # free reshape


def pspmat(src, dst):
    """Plain-JAX glue mirroring PspWarp.pspmat (builds the 8-param M).

    src, dst: (B, 4, 2) quad correspondences -> M: (B, 8, 1)."""
    # TODO(synk): batched 8x8 linear solve (torch.solve) has no clean Pallas
    # equivalent at this size; kept as plain-JAX glue (only used to build M).
    B = src.shape[0]
    ones = jnp.ones((B, 4, 1), src.dtype)
    zeros = jnp.zeros((B, 4, 3), src.dtype)
    row0 = jnp.concatenate(
        [src, ones, zeros,
         -dst[..., 0:1] * src[..., 0:1], -dst[..., 0:1] * src[..., 1:2]], axis=2)
    row1 = jnp.concatenate(
        [zeros, src, ones,
         -dst[..., 1:2] * src[..., 0:1], -dst[..., 1:2] * src[..., 1:2]], axis=2)
    s = jnp.concatenate([row0, row1], axis=1)                    # (B, 8, 8)
    t = jnp.concatenate([dst[..., 0:1], dst[..., 1:2]], axis=1)  # (B, 8, 1)
    return jnp.linalg.solve(s, t)                                # (B, 8, 1)


def _reference_forward(xy, M):
    Mp = jnp.transpose(M, (0, 2, 1))  # (B, 1, 8)
    x, y = xy[..., 0], xy[..., 1]
    t = Mp[..., 6] * x + Mp[..., 7] * y + 1.0
    u = (Mp[..., 0] * x + Mp[..., 1] * y + Mp[..., 2]) / t
    v = (Mp[..., 3] * x + Mp[..., 4] * y + Mp[..., 5]) / t
    return jnp.stack((u, v), axis=2)


if __name__ == "__main__":
    key = jax.random.PRNGKey(0)

    ok = True
    for (B, N) in [(2, 128), (3, 1000)]:   # second case exercises pad + multi-tile path
        k1, k2, key = jax.random.split(key, 3)

        # Points to warp, in [0, 1)^2.
        xy = jax.random.uniform(k1, (B, N, 2), dtype=jnp.float32)

        # Realistic perspective matrix: unit quad -> perturbed quad.
        src = jnp.tile(jnp.array([[0., 0.], [1., 0.], [1., 1.], [0., 1.]],
                                 dtype=jnp.float32)[None], (B, 1, 1))
        dst = src + 0.05 * jax.random.normal(k2, (B, 4, 2), dtype=jnp.float32)
        M = pspmat(src, dst)  # (B, 8, 1)

        out = psp_warp(xy, M)
        jax.block_until_ready(out)

        ref = _reference_forward(xy, M)
        assert out.shape == (B, N, 2)
        ok = ok and bool(jnp.allclose(out, ref, atol=1e-5, rtol=1e-5))

    assert ok
    print("KERNEL_OK")
</pallas_src>

<mosaic_0001>
module attributes {stable_mosaic.version = 11 : i64} {
  func.func @_psp_warp_kernel(%arg0: i32, %arg1: i32, %arg2: memref<16xf32, #tpu.memory_space<smem>>, %arg3: memref<1x2x128xf32, #tpu.memory_space<vmem>>, %arg4: memref<1x2x128xf32, #tpu.memory_space<vmem>>) attributes {dimension_semantics = [#tpu.dimension_semantics<parallel>, #tpu.dimension_semantics<parallel>], iteration_bounds = array<i64: 2, 1>, scalar_prefetch = 0 : i64, scratch_operands = 0 : i64, tpu.core_type = #tpu.core_type<tc>, window_params = [{transform_indices = @transform_0, window_bounds = array<i64: 16>}, {transform_indices = @transform_1, window_bounds = array<i64: 1, 2, 128>}, {transform_indices = @transform_2, window_bounds = array<i64: 1, 2, 128>}]} {
    %c8_i32 = arith.constant 8 : i32
    %0 = arith.muli %arg0, %c8_i32 : i32
    %c0_i32 = arith.constant 0 : i32
    %1 = arith.addi %0, %c0_i32 : i32
    %2 = arith.index_cast %1 : i32 to index
    %3 = memref.load %arg2[%2] : memref<16xf32, #tpu.memory_space<smem>>
    %c1_i32 = arith.constant 1 : i32
    %4 = arith.addi %0, %c1_i32 : i32
    %5 = arith.index_cast %4 : i32 to index
    %6 = memref.load %arg2[%5] : memref<16xf32, #tpu.memory_space<smem>>
    %c2_i32 = arith.constant 2 : i32
    %7 = arith.addi %0, %c2_i32 : i32
    %8 = arith.index_cast %7 : i32 to index
    %9 = memref.load %arg2[%8] : memref<16xf32, #tpu.memory_space<smem>>
    %c3_i32 = arith.constant 3 : i32
    %10 = arith.addi %0, %c3_i32 : i32
    %11 = arith.index_cast %10 : i32 to index
    %12 = memref.load %arg2[%11] : memref<16xf32, #tpu.memory_space<smem>>
    %c4_i32 = arith.constant 4 : i32
    %13 = arith.addi %0, %c4_i32 : i32
    %14 = arith.index_cast %13 : i32 to index
    %15 = memref.load %arg2[%14] : memref<16xf32, #tpu.memory_space<smem>>
    %c5_i32 = arith.constant 5 : i32
    %16 = arith.addi %0, %c5_i32 : i32
    %17 = arith.index_cast %16 : i32 to index
    %18 = memref.load %arg2[%17] : memref<16xf32, #tpu.memory_space<smem>>
    %c6_i32 = arith.constant 6 : i32
    %19 = arith.addi %0, %c6_i32 : i32
    %20 = arith.index_cast %19 : i32 to index
    %21 = memref.load %arg2[%20] : memref<16xf32, #tpu.memory_space<smem>>
    %c7_i32 = arith.constant 7 : i32
    %22 = arith.addi %0, %c7_i32 : i32
    %23 = arith.index_cast %22 : i32 to index
    %24 = memref.load %arg2[%23] : memref<16xf32, #tpu.memory_space<smem>>
    %c0 = arith.constant 0 : index
    %c0_0 = arith.constant 0 : index
    %c0_1 = arith.constant 0 : index
    %25 = vector.load %arg3[%c0, %c0_0, %c0_1] : memref<1x2x128xf32, #tpu.memory_space<vmem>>, vector<1x2x128xf32>
    %26 = vector.shape_cast %25 : vector<1x2x128xf32> to vector<2x128xf32>
    %27 = tpu.iota {dimensions = array<i32: 1>} : vector<1x128xi32>
    %c1_i32_2 = arith.constant 1 : i32
    %28 = vector.broadcast %c1_i32_2 : i32 to vector<1x128xi32>
    %29 = arith.andi %27, %28 : vector<1x128xi32>
    %c0_i32_3 = arith.constant 0 : i32
    %30 = vector.broadcast %c0_i32_3 : i32 to vector<1x128xi32>
    %31 = arith.cmpi eq, %29, %30 : vector<1x128xi32>
    %c127_i32 = arith.constant 127 : i32
    %32 = tpu.dynamic_rotate %26 by %c127_i32 dim 1 : vector<2x128xf32>, i32 -> vector<2x128xf32>
    %c1_i32_4 = arith.constant 1 : i32
    %33 = tpu.dynamic_rotate %26 by %c1_i32_4 dim 1 : vector<2x128xf32>, i32 -> vector<2x128xf32>
    %34 = vector.shape_cast %31 : vector<1x128xi1> to vector<1x128xi1>
    %35 = vector.broadcast %34 : vector<1x128xi1> to vector<2x128xi1>
    %36 = arith.select %35, %26, %33 : vector<2x128xi1>, vector<2x128xf32>
    %37 = vector.shape_cast %31 : vector<1x128xi1> to vector<1x128xi1>
    %38 = vector.broadcast %37 : vector<1x128xi1> to vector<2x128xi1>
    %39 = arith.select %38, %32, %26 : vector<2x128xi1>, vector<2x128xf32>
    %40 = vector.broadcast %3 : f32 to vector<1x128xf32>
    %41 = vector.broadcast %12 : f32 to vector<1x128xf32>
    %42 = arith.select %31, %40, %41 : vector<1x128xi1>, vector<1x128xf32>
    %43 = vector.broadcast %6 : f32 to vector<1x128xf32>
    %44 = vector.broadcast %15 : f32 to vector<1x128xf32>
    %45 = arith.select %31, %43, %44 : vector<1x128xi1>, vector<1x128xf32>
    %46 = vector.broadcast %9 : f32 to vector<1x128xf32>
    %47 = vector.broadcast %18 : f32 to vector<1x128xf32>
    %48 = arith.select %31, %46, %47 : vector<1x128xi1>, vector<1x128xf32>
    %49 = vector.broadcast %21 : f32 to vector<2x128xf32>
    %50 = arith.mulf %49, %36 : vector<2x128xf32>
    %51 = vector.broadcast %24 : f32 to vector<2x128xf32>
    %52 = arith.mulf %51, %39 : vector<2x128xf32>
    %53 = arith.addf %50, %52 : vector<2x128xf32>
    %cst = arith.constant 1.000000e+00 : f32
    %54 = vector.broadcast %cst : f32 to vector<2x128xf32>
    %55 = arith.addf %53, %54 : vector<2x128xf32>
    %56 = vector.broadcast %42 : vector<1x128xf32> to vector<2x128xf32>
    %57 = arith.mulf %56, %36 : vector<2x128xf32>
    %58 = vector.broadcast %45 : vector<1x128xf32> to vector<2x128xf32>
    %59 = arith.mulf %58, %39 : vector<2x128xf32>
    %60 = arith.addf %57, %59 : vector<2x128xf32>
    %61 = vector.broadcast %48 : vector<1x128xf32> to vector<2x128xf32>
    %62 = arith.addf %60, %61 : vector<2x128xf32>
    %63 = arith.divf %62, %55 : vector<2x128xf32>
    %c0_5 = arith.constant 0 : index
    %c0_6 = arith.constant 0 : index
    %c0_7 = arith.constant 0 : index
    %64 = vector.load %arg4[%c0_5, %c0_6, %c0_7] : memref<1x2x128xf32, #tpu.memory_space<vmem>>, vector<1x2x128xf32>
    %65 = vector.shape_cast %64 : vector<1x2x128xf32> to vector<2x128xf32>
    %66 = vector.shape_cast %63 : vector<2x128xf32> to vector<1x2x128xf32>
    tpu.vector_store %arg4[%c0_5, %c0_6, %c0_7], %66 {strides = array<i32>} : memref<1x2x128xf32, #tpu.memory_space<vmem>>, vector<1x2x128xf32>,
    return
  }
  func.func @transform_0(%arg0: i32, %arg1: i32) -> i32 {
    %c0_i32 = arith.constant 0 : i32
    %c0_i32_0 = arith.constant 0 : i32
    return %c0_i32 : i32
  }
  func.func @transform_1(%arg0: i32, %arg1: i32) -> (i32, i32, i32) {
    %c0_i32 = arith.constant 0 : i32
    %c0_i32_0 = arith.constant 0 : i32
    return %arg0, %arg1, %c0_i32 : i32, i32, i32
  }
  func.func @transform_2(%arg0: i32, %arg1: i32) -> (i32, i32, i32) {
    %c0_i32 = arith.constant 0 : i32
    %c0_i32_0 = arith.constant 0 : i32
    return %arg0, %arg1, %c0_i32 : i32, i32, i32
  }
}

</mosaic_0001>

<bundles_post_ra>
// kernel: tpu_custom_call.1
= control target key start
LH: loop header
LB: loop body
LE: loop exit
PB: predicated region body
PF: predicated region fallthrough
CT: control target
= control target key end

     0   :  { %7 = vsyncpa [#allocation5], 0  ;;  %s835_s0 = inlined_call_operand.hbm [shape: f32[16], index: 0, kind: input, shape index: {}]   ;;  %s836_s1 = inlined_call_operand.hbm [shape: f32[2,2,128], index: 1, kind: input, shape index: {}]   ;;  %s837_s2 = inlined_call_operand.hbm [shape: f32[2,2,128], index: 2, kind: output, shape index: {}]  }
   0x1   :  { %8 = vsyncpa [#allocation3], 0 }
   0x2   :  { %10 = vsyncpa [#allocation3 + $0x1], 0 }
   0x3   :  { %11 = vsyncpa [#allocation4], 0 }
   0x4   :  { %13 = vsyncpa [#allocation4 + $0x1], 0  ;;  %s590_s9 = smov 0   ;;  %s592_s10 = smov 0  }
   0x5   :  { %s594_s11 = smov 0   ;;  %s596_s12 = smov 0  }
   0x6   :  { %s598_s13 = smov 0   ;;  %s600_s14 = smov 0  }
   0x7 LB: > { %s346_s15 = sadd.s32 4294967295, %s568_s14   ;;  %s347_s16 = sadd.s32 4294967294, %s568_s14   ;;  %s568_s14 = sphi %s600_s14, %s19_s14   ;;  %s564_s13 = sphi %s598_s13, %s863_s13   ;;  %s560_s12 = sphi %s596_s12, %s862_s12   ;;  %s556_s11 = sphi %s594_s11, %s861_s11   ;;  %s552_s10 = sphi %s592_s10, %s860_s10   ;;  %s548_s9 = sphi %s590_s9, %s859_s9  }
   0x8   : > { %p74_p0 = scmp.ne.s32.totalorder %s552_s10, %s548_s9  ;;  %p624_p1 = scmp.eq.s32.totalorder %s346_s15, 0 }
   0x9   : > { %p628_p2 = scmp.eq.s32.totalorder %s346_s15, 1  ;;  %p106_p3 = scmp.eq.s32.totalorder %s347_s16, 1 }
   0xa   : > { %s842_s17 = scalar_select %p624_p1, 1, 0 }
   0xb   : > { %p634_p4 = por %p624_p1, %p74_p0  ;;  %p348_p5 = scmp.ge.s32.totalorder %s568_s14, 1 }
   0xc   : > { %p639_p6 = por %p106_p3, %p74_p0  ;;  %p113_p7 = scmp.lt.s32.totalorder %s568_s14, 3 }
   0xd   : > { %s844_s19 = scalar_select %p634_p4, 1, 0 }
   0xe   : > { %s845_s20 = scalar_select %p639_p6, 1, 0 }
   0xf   : > { %p644_p8 = pnand %p348_p5, %p113_p7  ;;  %s31_s22 = sadd.s32 1, %s564_s13 }
  0x10   : > { %p658_p12 = scmp.ge.s32.totalorder %s31_s22, 2  ;;  %s61_s25 = sadd.s32 1, %s556_s11 }
  0x11   : > { %p370_p10 = pneg %p644_p8  ;;  %p68_p13 = scmp.ne.s32.totalorder %s556_s11, %s552_s10 }
  0x12   : > { %p69_p0 = scmp.eq.s32.totalorder %s568_s14, 0  ;;  %s439_s28 = scalar_lea.hbm %s835_s0, 16 }
  0x13   : > { %p654_p11 = pnand %p370_p10, %p624_p1  ;;  %p440_p3 = scmp.ne.s32.totalorder %s835_s0, %s439_s28 }
  0x14   : > { %p446_p9 = scmp.lt.u32.totalorder %s439_s28, %s835_s0 }
  0x15   : > { %p441_p5 = pneg %p654_p11 }
  0x17   : > { %p442_p7 = pnand %p441_p5, %p440_p3 }
  0x19   : > { %p443_p10 = pneg %p442_p7 }
  0x1b   : > { %p448_p6 = pnand %p446_p9, %p443_p10 }
  0x1d   : > { %451 = shalt.err (!%p448_p6)
}
  0x1e   : > { %s570_s5 = smov [#allocation2]   ;;  %s865_s22 = smov (%p658_p12, %s31_s22), 0 }
  0x1f   : > { %373 = dma.hbm_to_smem (!%p654_p11), %s835_s0, 16, %s570_s5, [#allocation5]  }
  0x20   : > { %p689_p6 = por %p69_p0, %p68_p13  ;;  %p698_p9 = por %p628_p2, %p68_p13 }
  0x21   : > { %s56_s16 = ssub.s32 %s564_s13, %s865_s22  ;;  %p383_p3 = scmp.lt.s32.totalorder %s568_s14, 2 }
  0x22   : > { %s850_s15 = scalar_select %p698_p9, 1, 0 }
  0x23   : > { %p59_p5 = scmp.eq.s32.totalorder %s56_s16, 0  ;;  %s135_s23 = sand.u32 1, %s556_s11  }
  0x24   : > { %s351_s24 = sshll.u32 %s135_s23, 1  ;;  %s352_s27 = sshll.u32 %s564_s13, 5 }
  0x25   : > { %s707_s26 = scalar_select %p59_p5, %s556_s11, %s61_s25  }
  0x26   : > { %s713_s30 = scalar_lea.hbm %s836_s1, %s352_s27  ;;  %s139_s18 = scalar_lea.vmem [#allocation6], %s351_s24 }
  0x27   : > { %s147_s3 = sshll.u32 %s139_s18, 4  ;;  %p719_p2 = pnand %p383_p3, %p689_p6  ;;  %s715_s3 = int_to_ptr.vmem [resolvable:$true] %s147_s3 }
  0x28   : > { %s136_s25 = scalar_lea.sflag [#allocation3], %s135_s23  ;;  %s452_s5 = scalar_lea.hbm %s713_s30, 32 }
  0x29   : > { %p453_p11 = scmp.ne.s32.totalorder %s713_s30, %s452_s5  ;;  %p454_p12 = pneg %p719_p2 }
  0x2a   : > { %s457_s16 = scalar_lea.hbm %s836_s1, 64  ;;  %p458_p7 = scmp.lt.u32.totalorder %s713_s30, %s836_s1 }
  0x2b   : > { %p455_p13 = pnand %p454_p12, %p453_p11  ;;  %p459_p10 = scmp.lt.u32.totalorder %s457_s16, %s452_s5 }
  0x2c   : > { %p461_p3 = scmp.lt.u32.totalorder %s452_s5, %s713_s30 }
  0x2d   : > { %p456_p0 = pneg %p455_p13  ;;  %p460_p6 = por %p459_p10, %p458_p7 }
  0x2f   : > { %p462_p5 = por %p461_p3, %p460_p6 }
  0x31   : > { %p463_p9 = pnand %p462_p5, %p456_p0 }
  0x33   : > { %466 = shalt.err (!%p463_p9)
}
  0x34   : > { %s467_s23 = scalar_lea.vmem %s715_s3, 32  ;;  %s571_s27 = smov [#allocation6]  }
  0x35   : > { %p468_p11 = scmp.ne.s32.totalorder %s715_s3, %s467_s23  ;;  %s472_s28 = sshll.u32 %s571_s27, 4  ;;  %s473_s28 = int_to_ptr.vmem [resolvable:$false] %s472_s28 }
  0x36   : > { %s474_s29 = scalar_lea.vmem %s473_s28, 64  ;;  %p475_p1 = scmp.lt.s32.totalorder %s715_s3, %s473_s28 }
  0x37   : > { %p470_p13 = pnand %p468_p11, %p454_p12  ;;  %p476_p7 = scmp.lt.s32.totalorder %s474_s29, %s467_s23 }
  0x39   : > { %p471_p4 = pneg %p470_p13  ;;  %p477_p10 = por %p476_p7, %p475_p1 }
  0x3b   : > { %p478_p6 = pnand %p477_p10, %p471_p4 }
  0x3d   : > { %481 = shalt.err (!%p478_p6)
}
  0x3e   : > { %377 = dma.hbm_to_vmem [thread:$0]  (!%p719_p2), %s713_s30, 32, %s715_s3, %s136_s25  }
  0x3f   : > { %156 = sbr.rel (%p644_p8) target bundleno = 231 (0xe7), region = 28  ;;  %p852_p9 = scmp.ne.s32.totalorder (!%p644_p8), %s842_s17, 0 }
  0x46   : > { %535 = dma.done.wait (%p852_p9), [#allocation5], 16  }
  0x47   : > { %537 = vsyncadd (%p852_p9), [#allocation5], 4294967280  ;;  %s755_s18 = sand.u32 1, %s552_s10   ;;  %p853_p1 = scmp.ne.s32.totalorder %s844_s19, 0 }
  0x48   : > { %s355_s4 = sshll.u32 %s755_s18, 1  ;;  %s163_s5 = scalar_lea.sflag [#allocation3], %s755_s18 }
  0x49   : > { %s166_s30 = scalar_lea.vmem [#allocation6], %s355_s4 }
  0x4a   : > { %539 = dma.done.wait (%p853_p1), %s163_s5, 32  }
  0x4b   : > { %541 = vsyncadd (%p853_p1), %s163_s5, 4294967264 }
  0x4c   : > { %171 = sfence }
  0x4d   : > { %v204_v0 = vld [vmem:[%s166_s30] sm:$0x3]  ;;  %s572_s17 = smov 127   ;;  %s573_s21 = smov 1   ;;  %v205_v1 = vlaneseq }
  0x4e   : > { %209 = vrot.lane.b32.xlu0 %v204_v0, %s572_s17  ;;  %s357_s3 = sshll.u32 %s560_s12, 3  ;;  %p856_p8 = scmp.ne.s32.totalorder %s850_s15, 0 }
  0x4f   : > { %v206_v2 = vand.u32 127, %v205_v1  ;;  %s202_s25 = sadd.s32 7, %s357_s3  ;;  %s200_s6 = sadd.s32 6, %s357_s3 }
  0x50   : > { %s203_s7 = sld [smem:[#allocation2 + %s202_s25]]  ;;  %s194_s8 = sadd.s32 3, %s357_s3 }
  0x51   : > { %s201_s16 = sld [smem:[#allocation2 + %s200_s6]]  ;;  %v207_v3 = vand.u32 1, %v206_v2  ;;  %s190_s24 = sadd.s32 1, %s357_s3 }
  0x52   : > { %211 = vrot.lane.b32.xlu0 %v204_v0, %s573_s21  ;;  %s196_s23 = sadd.s32 4, %s357_s3  ;;  %s189_s19 = sld [smem:[#allocation2 + %s357_s3]] }
  0x53   : > { %s195_s27 = sld [smem:[#allocation2 + %s194_s8]]  ;;  %vm766_vm0 = vcmp.eq.s32.totalorder %v207_v3, 0  ;;  %s192_s5 = sadd.s32 2, %s357_s3 }
  0x54   : > { %s191_s28 = sld [smem:[#allocation2 + %s190_s24]]  ;;  %s198_s30 = sadd.s32 5, %s357_s3 }
  0x55   : > { %s197_s29 = sld [smem:[#allocation2 + %s196_s23]]  ;;  %s359_s3 = sshll.u32 %s560_s12, 5 }
  0x56   : > { %v228_v7 = vstv %s203_s7  ;;  %s193_s17 = sld [smem:[#allocation2 + %s192_s5]]  ;;  %s187_s25 = scalar_lea.vmem [#allocation7], %s355_s4 }
  0x57   : > { %v226_v8 = vstv %s201_s16  ;;  %s199_s21 = sld [smem:[#allocation2 + %s198_s30]]  ;;  %s254_s6 = sshll.u32 %s187_s25, 4  ;;  %s788_s6 = int_to_ptr.vmem [resolvable:$true] %s254_s6 }
  0x58   : > { %v217_v13 = vstv %s189_s19  ;;  %s786_s8 = scalar_lea.hbm %s837_s2, %s359_s3  ;;  %s240_s24 = scalar_lea.sflag [#allocation4], %s755_s18 }
  0x59   : > { %v218_v14 = vstv %s195_s27  ;;  %s482_s23 = scalar_lea.vmem %s788_s6, 32  ;;  %s574_s12 = smov [#allocation7]  }
  0x5a   : > { %v220_v16 = vstv %s191_s28  ;;  %v219_v18 = vsel %vm766_vm0, %v217_v13, %v218_v14  ;;  %p483_p4 = scmp.ne.s32.totalorder %s788_s6, %s482_s23  ;;  %s486_s4 = sshll.u32 %s574_s12, 4  ;;  %s487_s4 = int_to_ptr.vmem [resolvable:$false] %s486_s4 }
  0x5b   : > { %v221_v17 = vstv %s197_s29  ;;  %s488_s19 = scalar_lea.vmem %s487_s4, 64  ;;  %p489_p0 = scmp.lt.s32.totalorder %s788_s6, %s487_s4 }
  0x5c   : > { %v222_v20 = vsel %vm766_vm0, %v220_v16, %v221_v17  ;;  %v223_v23 = vstv %s193_s17  ;;  %p484_p2 = pnand %p483_p4, %p856_p8  ;;  %p490_p3 = scmp.lt.s32.totalorder %s488_s19, %s482_s23 }
  0x5d   : > { %v224_v24 = vstv %s199_s21 }
  0x5e   : > { %v225_v26 = vsel %vm766_vm0, %v223_v23, %v224_v24  ;;  %p485_p12 = pneg %p484_p2  ;;  %p491_p5 = por %p490_p3, %p489_p0 }
  0x60   : > { %p492_p11 = pnand %p491_p5, %p485_p12 }
  0xc0   : > { %v210_v5 = vpop.permute.xlu0 %209 }
  0xc1   : > { %v216_v6 = vsel %vm766_vm0, %v210_v5, %v204_v0 }
  0xc2   : > { %v229_v11 = vmul.f32 %v228_v7, %v216_v6  ;;  %v233_v22 = vmul.f32 %v222_v20, %v216_v6 }
  0xc4   : > { %v212_v9 = vpop.permute.xlu0 %211 }
  0xc5   : > { %v215_v10 = vsel %vm766_vm0, %v204_v0, %v212_v9 }
  0xc6   : > { %v227_v12 = vmul.f32 %v226_v8, %v215_v10  ;;  %v232_v21 = vmul.f32 %v219_v18, %v215_v10 }
  0xc8   : > { %v230_v15 = vadd.f32 %v229_v11, %v227_v12  ;;  %v234_v25 = vadd.f32 %v233_v22, %v232_v21 }
  0xca   : > { %v231_v19 = vadd.f32 1.0, %v230_v15  ;;  %v235_v27 = vadd.f32 %v234_v25, %v225_v26 }
  0xcc   : > { %437 = vrcp.f32 %v231_v19 }
  0xd6   : > { %v438_v28 = vpop.eup %437 }
  0xd7   : > { %v237_v29 = vmul.f32 %v438_v28, %v235_v27 }
  0xd9   : > { %238 = vst [vmem:[%s187_s25] sm:$0x3] %v237_v29 }
  0xda   : > { %495 = shalt.err (!%p492_p11)
}
  0xdb   : > { %s496_s18 = scalar_lea.hbm %s786_s8, 32  ;;  %s500_s29 = scalar_lea.hbm %s837_s2, 64 }
  0xdc   : > { %p497_p13 = scmp.ne.s32.totalorder %s786_s8, %s496_s18  ;;  %p501_p6 = scmp.lt.u32.totalorder %s786_s8, %s837_s2 }
  0xdd   : > { %p502_p9 = scmp.lt.u32.totalorder %s500_s29, %s496_s18  ;;  %p504_p4 = scmp.lt.u32.totalorder %s496_s18, %s786_s8 }
  0xde   : > { %p498_p7 = pnand %p497_p13, %p856_p8 }
  0xdf   : > { %p503_p1 = por %p502_p9, %p501_p6 }
  0xe0   : > { %p499_p10 = pneg %p498_p7 }
  0xe1   : > { %p505_p2 = por %p504_p4, %p503_p1 }
  0xe3   : > { %p506_p12 = pnand %p505_p2, %p499_p10 }
  0xe5   : > { %509 = shalt.err (!%p506_p12)
}
  0xe6   : > { %368 = dma.vmem_to_hbm [thread:$0]  (%p856_p8), %s788_s6, 32, %s786_s8, %s240_s24  }
  0xe7 PF: > { %s266_s17 = sand.u32 1, %s548_s9   ;;  %p857_p0 = scmp.ne.s32.totalorder %s845_s20, 0 }
  0xe8   : > { %p858_p3 = scmp.ge.s32.totalorder %s568_s14, 2  ;;  %s267_s21 = scalar_lea.sflag [#allocation4], %s266_s17 }
  0xea   : > { %p379_p5 = pnand %p858_p3, %p857_p0 }
  0xec   : > { %543 = dma.done.wait (!%p379_p5), %s267_s21, 32  }
  0xed   : > { %545 = vsyncadd (!%p379_p5), %s267_s21, 4294967264  ;;  %s19_s14 = sadd.s32 1, %s568_s14   ;;  %s859_s9 = smov %s552_s10 }
  0xee   : > { %p16_p11 = scmp.ge.s32.totalorder %s19_s14, 4   ;;  %s860_s10 = smov %s556_s11 }
  0xef   : > { %s861_s11 = smov %s707_s26  ;;  %s862_s12 = smov %s564_s13 }
  0xf0   : > { %s863_s13 = smov %s865_s22  ;;  %18 = sbr.rel (!%p16_p11) target bundleno = 7 (0x7), region = 78 }
  0xf7   :  { %272 = vsyncpa [#allocation3], 1 }
  0xf8   :  { %274 = vsyncpa [#allocation3 + $0x1], 1 }
  0xf9   :  { %275 = vsyncpa [#allocation4], 1 }
  0xfa   :  { %277 = vsyncpa [#allocation4 + $0x1], 1 }
  0xfb   :  { %278 = vsyncpa [#allocation5], 1 }
  0xfc   :  { %280 = vsyncpa [#allocation5 + $0x1], 1 }

</bundles_post_ra>
